<compile_context>
chip_gen: v7x
topology: tpu7x:2x2x1
jax: 0.10.0
libtpu: 0.0.40
codegen_flags: <defaults>
</compile_context>

<pallas_src>
import jax
import jax.numpy as jnp
from jax.experimental import pallas as pl
from jax.experimental.pallas import tpu as pltpu


MAX_SEQ_LENGTH = 100                      # matches the PyTorch __init__ default
_BLOCK_BUDGET_BYTES = 2 * 1024 * 1024     # per-buffer block cap (see header)
_VMEM_LIMIT_BYTES = 32 * 1024 * 1024      # explicit scoped-VMEM budget, safe on v5e/v6e/v7x


def make_pe_table(d_model, max_seq_length=MAX_SEQ_LENGTH):
    """Sinusoidal table built exactly like the PyTorch buffer (f32, d_model even)."""
    assert d_model % 2 == 0, "d_model must be even (matches PyTorch construction)"
    position = jnp.arange(max_seq_length, dtype=jnp.float32)[:, None]
    div_term = jnp.exp(
        jnp.arange(0, d_model, 2, dtype=jnp.float32) * (-jnp.log(10000.0) / d_model))
    pe = jnp.zeros((max_seq_length, d_model), jnp.float32)
    pe = pe.at[:, 0::2].set(jnp.sin(position * div_term))
    pe = pe.at[:, 1::2].set(jnp.cos(position * div_term))
    return pe


# ---------------------------------------------------------------------------
# Kernels
# ---------------------------------------------------------------------------

def _add_pe_2d_kernel(x_ref, pe_ref, o_ref):
    # x_ref/o_ref: (tb, ct) -- sublane-dense and lane-dense.  pe_ref: (1, ct).
    # The (1, ct) -> (tb, ct) sublane broadcast is VPU work hidden under HBM traffic.
    o_ref[...] = (x_ref[...].astype(jnp.float32) + pe_ref[...]).astype(o_ref.dtype)


def _add_pe_3d_kernel(x_ref, pe_ref, o_ref):
    # Fallback path: x_ref/o_ref: (tb, S, D); pe_ref: (S, D) with constant block index.
    o_ref[...] = (x_ref[...].astype(jnp.float32)
                  + pe_ref[...][None, :, :]).astype(o_ref.dtype)


# ---------------------------------------------------------------------------
# Tiling choice
# ---------------------------------------------------------------------------

def _choose_2d_tiles(B, L, bpe):
    """Pick (tb, ct) for the folded (B, S*D) view.

    ct is a multiple of 128 (or == L); tb is a multiple of 8 (or == B), so the
    (8, 128) tiling constraint is satisfied while cdiv grids mask ragged blocks.
    Blocks are capped near _BLOCK_BUDGET_BYTES; when the problem is big enough we
    keep several grid steps so the pipeline is primed and v7x's two TCs share work.
    """
    # lane tile
    if L <= 128 or 8 * L * bpe <= _BLOCK_BUDGET_BYTES:
        ct = L
    else:
        ct = min(L, max(128, (_BLOCK_BUDGET_BYTES // (8 * bpe)) // 128 * 128))
    # batch (sublane) tile
    if B <= 8:
        tb = B
    else:
        tb = min(B, max(8, (_BLOCK_BUDGET_BYTES // (ct * bpe)) // 8 * 8))
        # prefer >= 4 total grid steps (pipeline priming + megacore sharding)
        while tb > 8 and pl.cdiv(B, tb) * pl.cdiv(L, ct) < 4:
            tb = max(8, (tb // 2) // 8 * 8)
    return tb, ct


# ---------------------------------------------------------------------------
# Wrapper
# ---------------------------------------------------------------------------

def positional_encoding(x, pe=None):
    """x: (B, S, D). Returns x + sinusoidal positional encoding (same as PyTorch module)."""
    B, S, D = x.shape
    assert S <= MAX_SEQ_LENGTH, "sequence longer than max_seq_length"
    if pe is None:
        pe = make_pe_table(D)
    pe = pe[:S, :].astype(jnp.float32)            # (S, D) f32, matches the PyTorch buffer

    # PyTorch `x + pe` promotes half/bf16 inputs against the f32 buffer.
    out_dtype = jnp.promote_types(x.dtype, jnp.float32)
    bpe = max(jnp.dtype(x.dtype).itemsize, jnp.dtype(out_dtype).itemsize, 4)

    L = S * D
    if L % 128 == 0:
        # --- folded, lane-dense + sublane-dense path -------------------------------
        x2 = x.reshape(B, L)
        pe2 = pe.reshape(1, L)
        tb, ct = _choose_2d_tiles(B, L, bpe)
        grid = (pl.cdiv(B, tb), pl.cdiv(L, ct))
        out = pl.pallas_call(
            _add_pe_2d_kernel,
            out_shape=jax.ShapeDtypeStruct((B, L), out_dtype),
            grid_spec=pltpu.PrefetchScalarGridSpec(
                num_scalar_prefetch=0,
                grid=grid,
                in_specs=[
                    pl.BlockSpec((tb, ct), lambda b, c: (b, c)),
                    pl.BlockSpec((1, ct), lambda b, c: (0, c)),   # tiny pe blocks
                ],
                out_specs=pl.BlockSpec((tb, ct), lambda b, c: (b, c)),
            ),
            compiler_params=pltpu.CompilerParams(
                dimension_semantics=("parallel", "parallel"),
                vmem_limit_bytes=_VMEM_LIMIT_BYTES),
        )(x2, pe2)
        return out.reshape(B, S, D)

    # --- fallback: (S, D) not foldable to a 128-multiple; block whole (S, D) planes ---
    row_bytes = S * D * bpe
    tb = max(1, min(B, _BLOCK_BUDGET_BYTES // max(1, row_bytes)))
    if B > 1:
        tb = min(tb, -(-B // 2))   # keep >= 2 grid steps for pipelining / megacore
    grid = (pl.cdiv(B, tb),)
    return pl.pallas_call(
        _add_pe_3d_kernel,
        out_shape=jax.ShapeDtypeStruct((B, S, D), out_dtype),
        grid_spec=pltpu.PrefetchScalarGridSpec(
            num_scalar_prefetch=0,
            grid=grid,
            in_specs=[
                pl.BlockSpec((tb, S, D), lambda b: (b, 0, 0)),
                pl.BlockSpec((S, D), lambda b: (0, 0)),       # constant index: fetched once
            ],
            out_specs=pl.BlockSpec((tb, S, D), lambda b: (b, 0, 0)),
        ),
        compiler_params=pltpu.CompilerParams(
            dimension_semantics=("parallel",),
            vmem_limit_bytes=_VMEM_LIMIT_BYTES),
    )(x, pe)


def _reference(x):
    # pure-JAX reference mirroring the PyTorch buffer construction (+ f32 promotion)
    B, S, D = x.shape
    pe = make_pe_table(D)
    return x.astype(jnp.float32) + pe[None, :S, :]


if __name__ == "__main__":
    key = jax.random.PRNGKey(0)
    B, S, D = 2, 8, 32                     # batch=2, seq=8, d_model=32
    x = jax.random.normal(key, (B, S, D), dtype=jnp.float32)

    out = positional_encoding(x)
    jax.block_until_ready(out)

    ref = _reference(x)
    assert out.shape == (B, S, D)
    assert out.dtype == ref.dtype
    assert jnp.allclose(out, ref, atol=1e-5, rtol=1e-5), "mismatch vs reference"

    print("KERNEL_OK")
</pallas_src>

<mosaic_0001>
module attributes {stable_mosaic.version = 11 : i64} {
  func.func @_add_pe_2d_kernel(%arg0: i32, %arg1: i32, %arg2: memref<2x256xf32, #tpu.memory_space<vmem>>, %arg3: memref<1x256xf32, #tpu.memory_space<vmem>>, %arg4: memref<2x256xf32, #tpu.memory_space<vmem>>) attributes {dimension_semantics = [#tpu.dimension_semantics<parallel>, #tpu.dimension_semantics<parallel>], iteration_bounds = array<i64: 1, 1>, scalar_prefetch = 0 : i64, scratch_operands = 0 : i64, tpu.core_type = #tpu.core_type<tc>, window_params = [{transform_indices = @transform_0, window_bounds = array<i64: 2, 256>}, {transform_indices = @transform_1, window_bounds = array<i64: 1, 256>}, {transform_indices = @transform_2, window_bounds = array<i64: 2, 256>}]} {
    %c0 = arith.constant 0 : index
    %c0_0 = arith.constant 0 : index
    %0 = vector.load %arg2[%c0, %c0_0] : memref<2x256xf32, #tpu.memory_space<vmem>>, vector<2x256xf32>
    %c0_1 = arith.constant 0 : index
    %c0_2 = arith.constant 0 : index
    %1 = vector.load %arg3[%c0_1, %c0_2] : memref<1x256xf32, #tpu.memory_space<vmem>>, vector<1x256xf32>
    %2 = vector.broadcast %1 : vector<1x256xf32> to vector<2x256xf32>
    %3 = arith.addf %0, %2 : vector<2x256xf32>
    %c0_3 = arith.constant 0 : index
    %c0_4 = arith.constant 0 : index
    %4 = vector.load %arg4[%c0_3, %c0_4] : memref<2x256xf32, #tpu.memory_space<vmem>>, vector<2x256xf32>
    tpu.vector_store %arg4[%c0_3, %c0_4], %3 {strides = array<i32>} : memref<2x256xf32, #tpu.memory_space<vmem>>, vector<2x256xf32>,
    return
  }
  func.func @transform_0(%arg0: i32, %arg1: i32) -> (i32, i32) {
    %c0_i32 = arith.constant 0 : i32
    return %arg0, %arg1 : i32, i32
  }
  func.func @transform_1(%arg0: i32, %arg1: i32) -> (i32, i32) {
    %c0_i32 = arith.constant 0 : i32
    %c0_i32_0 = arith.constant 0 : i32
    return %c0_i32, %arg1 : i32, i32
  }
  func.func @transform_2(%arg0: i32, %arg1: i32) -> (i32, i32) {
    %c0_i32 = arith.constant 0 : i32
    return %arg0, %arg1 : i32, i32
  }
}

</mosaic_0001>

<bundles_post_ra>
// kernel: tpu_custom_call.1
= control target key start
LH: loop header
LB: loop body
LE: loop exit
PB: predicated region body
PF: predicated region fallthrough
CT: control target
= control target key end

     0   :  { %7 = vsyncpa [#allocation3], 0  ;;  %s157_s0 = inlined_call_operand.hbm [shape: f32[2,256], index: 0, kind: input, shape index: {}]   ;;  %s158_s1 = inlined_call_operand.vmem [shape: f32[1,256], index: 1, kind: input, shape index: {}]   ;;  %s159_s2 = inlined_call_operand.hbm [shape: f32[2,256], index: 2, kind: output, shape index: {}]  }
   0x1   :  { %8 = vsyncpa [#allocation4], 0  ;;  %s112_s9 = smov [#allocation2]   ;;  %s64_s13 = scalar_lea.hbm %s157_s0, 64 }
   0x2   :  { %s15_s10 = sshll.u32 %s112_s9, 4  ;;  %p65_p0 = scmp.ne.s32.totalorder %s157_s0, %s64_s13  ;;  %s16_s10 = int_to_ptr.vmem [resolvable:$true] %s15_s10 }
   0x3   :  { %p68_p1 = scmp.lt.u32.totalorder %s64_s13, %s157_s0 }
   0x5   :  { %p70_p2 = pnand %p68_p1, %p65_p0 }
   0x7   :  { %73 = shalt.err (!%p70_p2)
}
   0x8   :  { %s74_s18 = scalar_lea.vmem %s16_s10, 64  ;;  %p79_p4 = scmp.lt.s32.totalorder %s16_s10, %s16_s10 }
   0x9   :  { %p75_p3 = scmp.ne.s32.totalorder %s16_s10, %s74_s18  ;;  %p80_p5 = scmp.lt.s32.totalorder %s74_s18, %s74_s18 }
   0xb   :  { %p81_p6 = por %p80_p5, %p79_p4 }
   0xd   :  { %p82_p7 = pnand %p81_p6, %p75_p3 }
   0xf   :  { %85 = shalt.err (!%p82_p7)
}
  0x10   :  { %18 = dma.hbm_to_vmem [thread:$0]  %s157_s0, 64, %s16_s10, [#allocation3]  }
  0x11   :  { %108 = dma.done.wait [#allocation3], 64  }
  0x12   :  { %109 = vsyncadd [#allocation3], 4294967232  ;;  %v27_v0 = vlaneseq  ;;  %v113_v1 = vmov 1983009808   ;;  %v25_v7 = vld [vmem:[%s158_s1] sm:$0x3] }
  0x13   :  { %v37_v2 = vunpack.c.l.s4 %v113_v1  ;;  %v24_v12 = vld [vmem:[#allocation2] sm:$0xf]  ;;  %s114_s23 = smov [#allocation5]  }
  0x14   :  { %v28_v3 = vshrl.u32 %v27_v0, 7  ;;  %s52_s0 = sshll.u32 %s114_s23, 4  ;;  %s53_s0 = int_to_ptr.vmem [resolvable:$true] %s52_s0 }
  0x15   :  { %v38_v6 = vunpack.c.0.s8 %v37_v2  ;;  %s86_s24 = scalar_lea.vmem %s53_s0, 64  ;;  %p91_p9 = scmp.lt.s32.totalorder %s53_s0, %s53_s0 }
  0x16   :  { %v29_v4 = vsub.s32 0, %v28_v3  ;;  %v33_v5 = vsub.s32 1, %v28_v3  ;;  %p87_p8 = scmp.ne.s32.totalorder %s53_s0, %s86_s24  ;;  %p92_p10 = scmp.lt.s32.totalorder %s86_s24, %s86_s24 }
  0x17   :  { %v41_v10 = vsub.s32 %v38_v6, %v28_v3 }
  0x18   :  { %v30_v8 = vrot.slane %v25_v7, %v29_v4  ;;  %v34_v9 = vrot.slane %v25_v7, %v33_v5  ;;  %p93_p11 = por %p92_p10, %p91_p9 }
  0x1a   :  { %v35_v11 = vcombine.low %v30_v8, %v34_v9  ;;  %p94_p12 = pnand %p93_p11, %p87_p8 }
  0x1c   :  { %v42_v13 = vrot.slane %v35_v11, %v41_v10 }
  0x1e   :  { %v44_v14 = vadd.f32 %v42_v13, %v24_v12 }
  0x20   :  { %45 = vst [vmem:[#allocation5] sm:$0xf] %v44_v14 }
  0x21   :  { %97 = shalt.err (!%p94_p12)
}
  0x22   :  { %s98_s26 = scalar_lea.hbm %s159_s2, 64 }
  0x23   :  { %p99_p13 = scmp.ne.s32.totalorder %s159_s2, %s98_s26  ;;  %p102_p0 = scmp.lt.u32.totalorder %s98_s26, %s159_s2 }
  0x25   :  { %p104_p1 = pnand %p102_p0, %p99_p13 }
  0x27   :  { %107 = shalt.err (!%p104_p1)
}
  0x28   :  { %55 = dma.vmem_to_hbm [thread:$0]  %s53_s0, 64, %s159_s2, [#allocation4]  }
  0x29   :  { %110 = dma.done.wait [#allocation4], 64  }
  0x2a   :  { %111 = vsyncadd [#allocation4], 4294967232 }
  0x2b   :  { %59 = vsyncpa [#allocation3], 1 }
  0x2c   :  { %60 = vsyncpa [#allocation4], 1 }

</bundles_post_ra>
